<compile_context>
chip_gen: v5e
topology: v5e:2x2
jax: 0.10.0
libtpu: 0.0.40
codegen_flags: <defaults>
</compile_context>

<pallas_src>
import functools

import jax
import jax.numpy as jnp
from jax import lax
from jax.experimental import pallas as pl
from jax.experimental.pallas import tpu as pltpu


# murmur3-style finalizer constants as plain Python ints (their signed-int32
# values) -> they become jaxpr literals, not captured array constants.
_C1 = -1640531527   # 0x9E3779B9
_C2 = -2048144789   # 0x85EBCA6B
_C3 = -1028477379   # 0xC2B2AE35


def _hash32(v, seed):
    """Stateless per-element hash; wrapping int32 arithmetic throughout."""
    h = v * _C1 + seed
    h = h ^ lax.shift_right_logical(h, 16)
    h = h * _C2
    h = h ^ lax.shift_right_logical(h, 13)
    h = h * _C3
    h = h ^ lax.shift_right_logical(h, 16)
    return h


def _word_dropout_kernel(seed_ref, x_ref, o_ref, *,
                         tile_rows, fold, hidden_log2, keep_threshold):
    seed = seed_ref[0]
    base = pl.program_id(0) * tile_rows

    if fold == 1:
        # One keep decision per word row; lane-broadcast by the select below.
        rows = base + lax.broadcasted_iota(jnp.int32, (tile_rows, 1), 0)
    else:
        # H < 128: `fold` consecutive words are packed along the lane dim, so
        # the keep decision varies per lane-group of size H = 2**hidden_log2.
        width = fold << hidden_log2           # == 128
        sub = lax.broadcasted_iota(jnp.int32, (tile_rows, width), 0)
        lane = lax.broadcasted_iota(jnp.int32, (tile_rows, width), 1)
        rows = (base + sub) * fold + lax.shift_right_logical(lane, hidden_log2)

    h = _hash32(rows, seed)
    # Strip the sign bit -> uniform in [0, 2^31); keep iff below threshold.
    keep = lax.shift_right_logical(h, 1) < keep_threshold
    # Whole-word drop: vselect (no cast / broadcast / multiply chain).
    o_ref[...] = jnp.where(keep, x_ref[...], jnp.zeros((), x_ref.dtype))


def word_dropout(x, seed, dropout_rate=0.05, training=True, *,
                 target_block_bytes=4 << 20):
    """Flair-style word dropout.  x: (B, S, H) -> mask(B, S, 1) * x."""
    if not training or not dropout_rate:
        return x

    B, S, H = x.shape
    R = B * S
    itemsize = jnp.dtype(x.dtype).itemsize
    keep_prob = 1.0 - float(dropout_rate)
    keep_threshold = min(int(keep_prob * (1 << 31)), (1 << 31) - 1)

    # --- layout: lane-dense output when H < 128 -----------------------------
    # If H divides 128 (so H is a power of two) and the row count permits,
    # fold `fold` consecutive words into the lane dim: (R, H) -> (R/fold, 128).
    fold = 1
    if H < 128 and 128 % H == 0 and R % (128 // H) == 0:
        fold = 128 // H
    rows_total = R // fold
    W = fold * H
    hidden_log2 = (int(H).bit_length() - 1) if fold > 1 else 0

    xf = x.reshape(rows_total, W)   # contiguous reshape, no data movement

    # --- tile sizing: purely HBM-bandwidth-bound streaming kernel -----------
    # ~4 MiB blocks; input + output double-buffered ~16 MiB VMEM.  Row tiles
    # are multiples of 32 (f32/bf16/int8 sublane packing).  The ragged final
    # block is masked by Pallas, so no host-side padding/slicing is needed.
    tile_cols = W
    if (fold == 1 and W > 128 and W % 128 == 0
            and 32 * W * itemsize > target_block_bytes):
        # Very wide hidden dim: also tile the lane axis (mask is row-only, so
        # the column axis is trivially parallel) to keep double-buffering.
        tile_cols = max(128, (target_block_bytes // (32 * itemsize)) // 128 * 128)
        tile_cols = min(tile_cols, W)
    tile_rows = max(32, (target_block_bytes // (tile_cols * itemsize)) // 32 * 32)
    tile_rows = int(min(tile_rows, rows_total))   # full-dim block if small

    grid = (pl.cdiv(rows_total, tile_rows), pl.cdiv(W, tile_cols))

    tile_bytes = tile_rows * tile_cols * itemsize
    vmem_limit = int(min(64 << 20, max(32 << 20, 5 * tile_bytes)))

    seed_arr = jnp.asarray([seed], dtype=jnp.int32)
    kern = functools.partial(_word_dropout_kernel, tile_rows=tile_rows,
                             fold=fold, hidden_log2=hidden_log2,
                             keep_threshold=keep_threshold)

    out = pl.pallas_call(
        kern,
        out_shape=jax.ShapeDtypeStruct((rows_total, W), x.dtype),
        grid_spec=pltpu.PrefetchScalarGridSpec(
            num_scalar_prefetch=1,   # seed lives in SMEM
            grid=grid,
            in_specs=[pl.BlockSpec((tile_rows, tile_cols),
                                   lambda i, j, seed: (i, j))],
            out_specs=pl.BlockSpec((tile_rows, tile_cols),
                                   lambda i, j, seed: (i, j)),
        ),
        compiler_params=pltpu.CompilerParams(
            # Stateless hash PRNG -> grid steps independent -> shard across
            # both TensorCores on v7x; harmless on single-TC chips.
            dimension_semantics=("parallel", "parallel"),
            vmem_limit_bytes=vmem_limit,
        ),
        cost_estimate=pl.CostEstimate(
            flops=10 * R,
            transcendentals=0,
            bytes_accessed=2 * R * H * itemsize),
    )(seed_arr, xf)

    return out.reshape(B, S, H)


def _check_word_semantics(x, out):
    """Every (b, s) word is either exactly kept or exactly zeroed."""
    B, S, H = x.shape
    xr = jnp.asarray(x).reshape(B * S, H)
    orr = jnp.asarray(out).reshape(B * S, H)
    kept = jnp.all(orr == xr, axis=-1)
    dropped = jnp.all(orr == 0.0, axis=-1)
    assert bool(jnp.all(kept | dropped)), \
        "each word must be fully kept or fully dropped"


if __name__ == "__main__":
    key = jax.random.PRNGKey(0)
    rate = 0.5   # large rate so both branches (kept / dropped) are exercised

    # Case 1: H < 128 and divides 128 -> lane-dense folded layout path.
    B, S, H = 2, 8, 32
    x = jax.random.normal(key, (B, S, H), dtype=jnp.float32)
    out = jax.block_until_ready(
        word_dropout(x, seed=1234, dropout_rate=rate, training=True))
    _check_word_semantics(x, out)

    # eval mode is identity
    out_eval = word_dropout(x, seed=1234, dropout_rate=rate, training=False)
    assert bool(jnp.all(out_eval == x))

    # Case 2: H that does not divide 128 -> plain (rows, H) path.
    H2 = 48
    x2 = jax.random.normal(jax.random.PRNGKey(1), (B, S, H2), dtype=jnp.float32)
    out2 = jax.block_until_ready(
        word_dropout(x2, seed=7, dropout_rate=rate, training=True))
    _check_word_semantics(x2, out2)

    print("KERNEL_OK")
</pallas_src>

<mosaic_0001>
module attributes {stable_mosaic.version = 11 : i64} {
  func.func @_word_dropout_kernel(%arg0: i32, %arg1: i32, %arg2: memref<1xi32, #tpu.memory_space<smem>>, %arg3: memref<4x128xf32, #tpu.memory_space<vmem>>, %arg4: memref<4x128xf32, #tpu.memory_space<vmem>>) attributes {dimension_semantics = [#tpu.dimension_semantics<parallel>, #tpu.dimension_semantics<parallel>], iteration_bounds = array<i64: 1, 1>, scalar_prefetch = 1 : i64, scratch_operands = 0 : i64, tpu.core_type = #tpu.core_type<tc>, window_params = [{transform_indices = @transform_0, window_bounds = array<i64: 4, 128>}, {transform_indices = @transform_1, window_bounds = array<i64: 4, 128>}]} {
    %c0 = arith.constant 0 : index
    %0 = memref.load %arg2[%c0] : memref<1xi32, #tpu.memory_space<smem>>
    %c4_i32 = arith.constant 4 : i32
    %1 = arith.muli %arg0, %c4_i32 : i32
    %2 = tpu.iota {dimensions = array<i32: 0>} : vector<4x128xi32>
    %3 = tpu.iota {dimensions = array<i32: 1>} : vector<4x128xi32>
    %4 = vector.broadcast %1 : i32 to vector<4x128xi32>
    %5 = arith.addi %4, %2 : vector<4x128xi32>
    %c4_i32_0 = arith.constant 4 : i32
    %6 = vector.broadcast %c4_i32_0 : i32 to vector<4x128xi32>
    %7 = arith.muli %5, %6 : vector<4x128xi32>
    %c5_i32 = arith.constant 5 : i32
    %8 = vector.broadcast %c5_i32 : i32 to vector<4x128xi32>
    %9 = arith.shrui %3, %8 : vector<4x128xi32>
    %10 = arith.addi %7, %9 : vector<4x128xi32>
    %c-1640531527_i32 = arith.constant -1640531527 : i32
    %11 = vector.broadcast %c-1640531527_i32 : i32 to vector<4x128xi32>
    %12 = arith.muli %10, %11 : vector<4x128xi32>
    %13 = vector.broadcast %0 : i32 to vector<4x128xi32>
    %14 = arith.addi %12, %13 : vector<4x128xi32>
    %c16_i32 = arith.constant 16 : i32
    %15 = vector.broadcast %c16_i32 : i32 to vector<4x128xi32>
    %16 = arith.shrui %14, %15 : vector<4x128xi32>
    %17 = arith.xori %14, %16 : vector<4x128xi32>
    %c-2048144789_i32 = arith.constant -2048144789 : i32
    %18 = vector.broadcast %c-2048144789_i32 : i32 to vector<4x128xi32>
    %19 = arith.muli %17, %18 : vector<4x128xi32>
    %c13_i32 = arith.constant 13 : i32
    %20 = vector.broadcast %c13_i32 : i32 to vector<4x128xi32>
    %21 = arith.shrui %19, %20 : vector<4x128xi32>
    %22 = arith.xori %19, %21 : vector<4x128xi32>
    %c-1028477379_i32 = arith.constant -1028477379 : i32
    %23 = vector.broadcast %c-1028477379_i32 : i32 to vector<4x128xi32>
    %24 = arith.muli %22, %23 : vector<4x128xi32>
    %c16_i32_1 = arith.constant 16 : i32
    %25 = vector.broadcast %c16_i32_1 : i32 to vector<4x128xi32>
    %26 = arith.shrui %24, %25 : vector<4x128xi32>
    %27 = arith.xori %24, %26 : vector<4x128xi32>
    %c1_i32 = arith.constant 1 : i32
    %28 = vector.broadcast %c1_i32 : i32 to vector<4x128xi32>
    %29 = arith.shrui %27, %28 : vector<4x128xi32>
    %c1073741824_i32 = arith.constant 1073741824 : i32
    %30 = vector.broadcast %c1073741824_i32 : i32 to vector<4x128xi32>
    %31 = arith.cmpi slt, %29, %30 : vector<4x128xi32>
    %c0_2 = arith.constant 0 : index
    %c0_3 = arith.constant 0 : index
    %32 = vector.load %arg3[%c0_2, %c0_3] : memref<4x128xf32, #tpu.memory_space<vmem>>, vector<4x128xf32>
    %cst = arith.constant 0.000000e+00 : f32
    %33 = vector.broadcast %cst : f32 to vector<4x128xf32>
    %34 = arith.select %31, %32, %33 : vector<4x128xi1>, vector<4x128xf32>
    %c0_4 = arith.constant 0 : index
    %c0_5 = arith.constant 0 : index
    %35 = vector.load %arg4[%c0_4, %c0_5] : memref<4x128xf32, #tpu.memory_space<vmem>>, vector<4x128xf32>
    tpu.vector_store %arg4[%c0_4, %c0_5], %34 {strides = array<i32>} : memref<4x128xf32, #tpu.memory_space<vmem>>, vector<4x128xf32>,
    return
  }
  func.func @transform_0(%arg0: i32, %arg1: i32, %arg2: memref<1xi32, #tpu.memory_space<smem>>) -> (i32, i32) {
    %c0_i32 = arith.constant 0 : i32
    return %arg0, %arg1 : i32, i32
  }
  func.func @transform_1(%arg0: i32, %arg1: i32, %arg2: memref<1xi32, #tpu.memory_space<smem>>) -> (i32, i32) {
    %c0_i32 = arith.constant 0 : i32
    return %arg0, %arg1 : i32, i32
  }
}

</mosaic_0001>

<bundles_post_ra>
// kernel: tpu_custom_call.1
= control target key start
LH: loop header
LB: loop body
LE: loop exit
PB: predicated region body
PF: predicated region fallthrough
CT: control target
= control target key end

     0   :  { %8 = vsyncpa [#allocation5], 0  ;;  %s149_s0 = inlined_call_operand.<no memory space> [shape: s32[1], index: 0, kind: input, shape index: {}]   ;;  %s150_s1 = inlined_call_operand.hbm [shape: f32[4,128], index: 1, kind: input, shape index: {}]   ;;  %s151_s2 = inlined_call_operand.hbm [shape: f32[4,128], index: 2, kind: output, shape index: {}]  }
   0x1   :  { %9 = vsyncpa [#allocation6], 0  ;;  %s15_s11 = sshll.u32 %s150_s1, 4  ;;  %s123_s12 = smov [#allocation4]   ;;  %s16_s11 = int_to_ptr.hbm [resolvable:$true] %s15_s11 }
   0x2   :  { %s17_s13 = sshll.u32 %s123_s12, 4  ;;  %s18_s13 = int_to_ptr.vmem [resolvable:$true] %s17_s13 }
   0x3   :  { %20 = dma.hbm_to_vmem [thread:$0]  %s16_s11, 64, %s18_s13, [#allocation5]  }
   0x4   :  { %119 = dma.done.wait [#allocation5], 64  }
   0x5   :  { %120 = vsyncadd [#allocation5], 4294967232  ;;  %v27_v0 = vlaneseq  ;;  %v37_v6 = vstv %s149_s0  ;;  %s124_s1 = smov [#allocation7]   ;;  %s59_s19 = sshll.u32 %s151_s2, 4  ;;  %v49_v18 = vld [vmem:[#allocation4] sm:$0xf]  ;;  %s60_s19 = int_to_ptr.hbm [resolvable:$true] %s59_s19 }
   0x6   :  { %s57_s16 = sshll.u32 %s124_s1, 4  ;;  %s58_s16 = int_to_ptr.vmem [resolvable:$true] %s57_s16 }
   0x7   :  { %v28_v1 = vshrl.u32 %v27_v0, 7  ;;  %v30_v2 = vand.u32 127, %v27_v0 }
   0x9   :  { %v33_v3 = vmul.u32 4, %v28_v1  ;;  %v34_v4 = vshrl.u32 %v30_v2, 5 }
   0xb   :  { %v35_v5 = vadd.s32 %v34_v4, %v33_v3 }
   0xd   :  { %v36_v7 = vmul.u32 2654435769, %v35_v5 }
   0xf   :  { %v38_v8 = vadd.s32 %v37_v6, %v36_v7 }
  0x11   :  { %v39_v9 = vshrl.u32 %v38_v8, 16 }
  0x13   :  { %v40_v10 = vxor.u32 %v39_v9, %v38_v8 }
  0x15   :  { %v41_v11 = vmul.u32 2246822507, %v40_v10 }
  0x17   :  { %v42_v12 = vshrl.u32 %v41_v11, 13 }
  0x19   :  { %v43_v13 = vxor.u32 %v42_v12, %v41_v11 }
  0x1b   :  { %v44_v14 = vmul.u32 3266489917, %v43_v13 }
  0x1d   :  { %v45_v15 = vshrl.u32 %v44_v14, 16 }
  0x1f   :  { %v46_v16 = vxor.u32 %v45_v15, %v44_v14 }
  0x21   :  { %v47_v17 = vshrl.u32 %v46_v16, 1 }
  0x23   :  { %vm48_vm0 = vcmp.lt.s32.totalorder %v47_v17, 1073741824 }
  0x24   :  { %v50_v19 = vsel %vm48_vm0, %v49_v18, 0.0 }
  0x25   :  { %51 = vst [vmem:[#allocation7] sm:$0xf] %v50_v19 }
  0x26   :  { %62 = dma.vmem_to_hbm [thread:$0]  %s58_s16, 64, %s60_s19, [#allocation6]  }
  0x27   :  { %121 = dma.done.wait [#allocation6], 64  }
  0x28   :  { %122 = vsyncadd [#allocation6], 4294967232 }
  0x29   :  { %67 = vsyncpa [#allocation5], 1 }
  0x2a   :  { %68 = vsyncpa [#allocation6], 1 }

</bundles_post_ra>
